<compile_context>
chip_gen: v5e
topology: v5e:2x2
jax: 0.10.0
libtpu: 0.0.40
codegen_flags: <defaults>
</compile_context>

<pallas_src>
import functools

import jax
import jax.numpy as jnp
from jax.experimental import pallas as pl
from jax.experimental.pallas import tpu as pltpu


def _round_up(x, m):
    return (x + m - 1) // m * m


def _pick_tile_v2(v_pad, tile_v, cap=2048):
    """Larger vocab tile for phase 2 (must divide V_pad, capped at `cap`)."""
    for mult in (4, 2, 1):
        cand = tile_v * mult
        if cand <= max(cap, tile_v) and v_pad % cand == 0:
            return cand
    return tile_v


def _vmem_limit(block_bytes_est):
    """Scoped-VMEM request: >= compiler default, capped for v7x's 64 MiB VMEM."""
    return int(min(max(32 << 20, 2 * block_bytes_est), 48 << 20))


def _phase1_kernel(x0_ref, w0_ref, b0_ref, wh_ref, whcs_ref,
                   s_ref, wgs_ref, wgh_ref, bg_ref,
                   gh_ref, acc_ref, mx_ref, *, approx_sigmoid):
    """Row pre-pass: reduce over vocab tiles, emit gh = g * h_lm at the last tile."""
    v = pl.program_id(1)

    @pl.when(v == 0)
    def _init():
        acc_ref[...] = jnp.zeros_like(acc_ref)
        mx_ref[...] = jnp.full_like(mx_ref, -jnp.inf)

    # l_lm tile = x0 @ W0_tile + b0_tile            [tm, tv] (f32)
    l = jnp.dot(x0_ref[...], w0_ref[...],
                preferred_element_type=jnp.float32) + b0_ref[...]
    # accumulate the V-contraction of hidden_layer and the running row max
    acc_ref[...] += jnp.dot(l.astype(wh_ref.dtype), wh_ref[...],
                            preferred_element_type=jnp.float32)
    mx_ref[...] = jnp.maximum(mx_ref[...], jnp.max(l, axis=-1, keepdims=True))

    @pl.when(v == pl.num_programs(1) - 1)
    def _finalize():
        # (l - rowmax) @ Wh == l @ Wh - rowmax * colsum(Wh)
        h = jnp.maximum(acc_ref[...] - mx_ref[...] * whcs_ref[...], 0.0)
        gp = (jnp.dot(s_ref[...], wgs_ref[...], preferred_element_type=jnp.float32)
              + jnp.dot(h.astype(wgh_ref.dtype), wgh_ref[...],
                        preferred_element_type=jnp.float32)
              + bg_ref[...])
        denom = 1.0 + jnp.exp(-gp)                    # exp runs on the EUP slot
        if approx_sigmoid:
            g = pl.reciprocal(denom, approx=True)     # EUP vrcp, divide off the VALU
        else:
            g = 1.0 / denom                           # exact path (f32 matmul_dtype)
        gh_ref[...] = (g * h).astype(gh_ref.dtype)


def _phase2_kernel(scf_ref, w1_ref, b1_ref, out_ref):
    """logits tile = ReLU([s ; g*h_lm] @ W1 + b1) — single deep-K MXU pass."""
    logits = jnp.dot(scf_ref[...], w1_ref[...],
                     preferred_element_type=jnp.float32) + b1_ref[...]
    out_ref[...] = jnp.maximum(logits, 0.0).astype(out_ref.dtype)


def cold_fusion_forward(unprojected_outs, params, *, tile_m=512, tile_v=1024,
                        matmul_dtype=jnp.bfloat16, logits_dtype=jnp.float32):
    """JAX/Pallas equivalent of ColdFusionStrategy.forward.

    Args:
      unprojected_outs: list of [B, S, D_i] arrays; element 0 is the LM decoder.
      params: dict of weights stored transposed ([in, out]) relative to nn.Linear:
        w0 [D0, V], b0 [1, V]          (output_projections[0])
        wh [V, H]                      (hidden_layer, bias=False)
        wg [Dt+H, H], bg [1, H]        (gating_network, rows: [s ; h_lm])
        w1 [Dt+H, V], b1 [1, V]        (output_projections[1], rows: [s ; g*h_lm])
      tile_m / tile_v: row / vocab tiles (clipped & padded to the problem size).
      matmul_dtype: streaming dtype of MXU operands (f32 accumulation).
      logits_dtype: output dtype (bf16 halves the dominant phase-2 write on v5e).
    Returns:
      (logits [B, S, V] logits_dtype, None)
    """
    assert len(unprojected_outs) >= 2
    B, S, D0 = unprojected_outs[0].shape
    M = B * S
    V = params["w0"].shape[1]
    H = params["wh"].shape[1]
    Dt = sum(int(o.shape[-1]) for o in unprojected_outs[1:])
    wd = jnp.dtype(matmul_dtype)
    isz = wd.itemsize
    osz = jnp.dtype(logits_dtype).itemsize

    # ---- layout prep done once in XLA (no in-kernel concats / relayouts) ----
    x0 = unprojected_outs[0].reshape(M, D0)
    s = jnp.concatenate([o.reshape(M, o.shape[-1]) for o in unprojected_outs[1:]],
                        axis=-1)

    # ---- tile selection: rows to a multiple of 16 (bf16 sublane packing),
    #      vocab padded to a multiple of tile_v (no divisibility restriction) ----
    tile_m = max(16, min(_round_up(tile_m, 16), _round_up(M, 16)))
    M_pad = _round_up(M, tile_m)
    tile_v = max(128, min(_round_up(tile_v, 128), _round_up(V, 128)))
    V_pad = _round_up(V, tile_v)
    tile_v2 = _pick_tile_v2(V_pad, tile_v)          # bigger vocab tile in phase 2

    if M_pad != M:
        x0 = jnp.pad(x0, ((0, M_pad - M), (0, 0)))
        s = jnp.pad(s, ((0, M_pad - M), (0, 0)))

    x0c = x0.astype(wd)
    sc = s.astype(wd)
    w0 = params["w0"].astype(wd)
    wh = params["wh"].astype(wd)
    wg_s = params["wg"][:Dt].astype(wd)
    wg_h = params["wg"][Dt:].astype(wd)
    w1 = params["w1"].astype(wd)                    # un-split: fused phase-2 matmul
    b0 = params["b0"].astype(jnp.float32)
    bg = params["bg"].astype(jnp.float32)
    b1 = params["b1"].astype(jnp.float32)

    if V_pad != V:
        w0 = jnp.pad(w0, ((0, 0), (0, V_pad - V)))
        # Padded logit columns get a very negative bias so they never win the row
        # max; their contribution to l @ Wh is zeroed by the zero-padded Wh rows.
        b0 = jnp.pad(b0, ((0, 0), (0, V_pad - V)), constant_values=-1e9)
        wh = jnp.pad(wh, ((0, V_pad - V), (0, 0)))
        w1 = jnp.pad(w1, ((0, 0), (0, V_pad - V)))
        b1 = jnp.pad(b1, ((0, 0), (0, V_pad - V)))

    # colsum in the same (cast) precision the accumulation uses.
    wh_colsum = jnp.sum(wh.astype(jnp.float32), axis=0, keepdims=True)     # [1, H]

    num_m = M_pad // tile_m
    num_v1 = V_pad // tile_v
    num_v2 = V_pad // tile_v2

    approx_sigmoid = (wd != jnp.dtype(jnp.float32))

    # ---- phase 1: gh = sigmoid(gating) * ReLU(hidden)   [M_pad, H] in wd ----
    p1_bytes = 2 * (tile_m * D0 * isz + D0 * tile_v * isz + tile_v * 4
                    + tile_v * H * isz + H * 4 + tile_m * Dt * isz
                    + Dt * H * isz + H * H * isz + H * 4
                    + tile_m * H * isz) + tile_m * H * 4 + tile_m * 4
    gh = pl.pallas_call(
        functools.partial(_phase1_kernel, approx_sigmoid=approx_sigmoid),
        out_shape=jax.ShapeDtypeStruct((M_pad, H), wd),
        grid_spec=pltpu.PrefetchScalarGridSpec(
            num_scalar_prefetch=0,
            grid=(num_m, num_v1),                               # reduction axis last
            in_specs=[
                pl.BlockSpec((tile_m, D0), lambda m, v: (m, 0)),    # x0 (LM out)
                pl.BlockSpec((D0, tile_v), lambda m, v: (0, v)),    # W0
                pl.BlockSpec((1, tile_v), lambda m, v: (0, v)),     # b0
                pl.BlockSpec((tile_v, H), lambda m, v: (v, 0)),     # Wh
                pl.BlockSpec((1, H), lambda m, v: (0, 0)),          # colsum(Wh)
                pl.BlockSpec((tile_m, Dt), lambda m, v: (m, 0)),    # s = cat(outs[1:])
                pl.BlockSpec((Dt, H), lambda m, v: (0, 0)),         # Wg rows for s
                pl.BlockSpec((H, H), lambda m, v: (0, 0)),          # Wg rows for h_lm
                pl.BlockSpec((1, H), lambda m, v: (0, 0)),          # bg
            ],
            out_specs=pl.BlockSpec((tile_m, H), lambda m, v: (m, 0)),
            scratch_shapes=[pltpu.VMEM((tile_m, H), jnp.float32),   # acc of l_lm @ Wh
                            pltpu.VMEM((tile_m, 1), jnp.float32)],  # running row max
        ),
        compiler_params=pltpu.CompilerParams(
            dimension_semantics=("parallel", "arbitrary"),
            vmem_limit_bytes=_vmem_limit(p1_bytes)),
    )(x0c, w0, b0, wh, wh_colsum, sc, wg_s, wg_h, bg)

    # cheap [M, Dt+H] concat in XLA so phase 2 is one deep-K matmul
    s_cf = jnp.concatenate([sc, gh], axis=-1)                       # [M_pad, Dt+H] wd
    K = Dt + H

    # ---- phase 2: logits = ReLU(s_cf @ W1 + b1), vocab-outer grid ----
    p2_bytes = 2 * (tile_m * K * isz + K * tile_v2 * isz + tile_v2 * 4
                    + tile_m * tile_v2 * osz)
    logits = pl.pallas_call(
        _phase2_kernel,
        out_shape=jax.ShapeDtypeStruct((M_pad, V_pad), logits_dtype),
        grid_spec=pltpu.PrefetchScalarGridSpec(
            num_scalar_prefetch=0,
            grid=(num_v2, num_m),                  # vocab outer: W1 tile streamed once
            in_specs=[
                pl.BlockSpec((tile_m, K), lambda v, m: (m, 0)),     # [s ; g*h_lm]
                pl.BlockSpec((K, tile_v2), lambda v, m: (0, v)),    # W1 (full K)
                pl.BlockSpec((1, tile_v2), lambda v, m: (0, v)),    # b1
            ],
            out_specs=pl.BlockSpec((tile_m, tile_v2), lambda v, m: (m, v)),
        ),
        compiler_params=pltpu.CompilerParams(
            # megacore split lands on the vocab axis -> each core reads disjoint
            # W1 halves; only the tiny s_cf reads are duplicated.
            dimension_semantics=("parallel", "arbitrary"),
            vmem_limit_bytes=_vmem_limit(p2_bytes)),
    )(s_cf, w1, b1)

    logits = logits[:M, :V].reshape(B, S, V)
    # TODO(synk): vocab_reduction_module / possible_translation_tokens not implemented
    # (module default is None, so None is returned, matching the PyTorch path used here).
    return logits, None


def _reference_forward(unprojected_outs, params):
    """Plain-JAX reference mirroring the PyTorch forward."""
    x0 = unprojected_outs[0]
    l_lm = x0 @ params["w0"] + params["b0"][0]
    l_lm = l_lm - jnp.max(l_lm, axis=-1, keepdims=True)
    h_lm = jnp.maximum(l_lm @ params["wh"], 0.0)
    s = jnp.concatenate(unprojected_outs[1:], axis=-1)
    g = jax.nn.sigmoid(jnp.concatenate([s, h_lm], axis=-1) @ params["wg"]
                       + params["bg"][0])
    s_cf = jnp.concatenate([s, g * h_lm], axis=-1)
    return jnp.maximum(s_cf @ params["w1"] + params["b1"][0], 0.0)


if __name__ == "__main__":
    B, S = 2, 8
    out_embed_dims = [32, 48]       # [LM decoder, translation decoder]
    hidden = 128                    # hidden_layer_size
    vocab = 1024
    D0 = out_embed_dims[0]
    Dt = sum(out_embed_dims[1:])

    key = jax.random.PRNGKey(0)
    ks = jax.random.split(key, 9)
    params = {
        # weights stored transposed ([in, out]) relative to nn.Linear
        "w0": 0.10 * jax.random.normal(ks[0], (D0, vocab), jnp.float32),
        "b0": 0.10 * jax.random.normal(ks[1], (1, vocab), jnp.float32),
        "wh": 0.03 * jax.random.normal(ks[2], (vocab, hidden), jnp.float32),
        "wg": 0.07 * jax.random.normal(ks[3], (Dt + hidden, hidden), jnp.float32),
        "bg": 0.07 * jax.random.normal(ks[4], (1, hidden), jnp.float32),
        "w1": 0.07 * jax.random.normal(ks[5], (Dt + hidden, vocab), jnp.float32),
        "b1": 0.07 * jax.random.normal(ks[6], (1, vocab), jnp.float32),
    }
    unprojected_outs = [
        jax.random.normal(ks[7], (B, S, out_embed_dims[0]), jnp.float32),
        jax.random.normal(ks[8], (B, S, out_embed_dims[1]), jnp.float32),
    ]

    ref = _reference_forward(unprojected_outs, params)

    # f32 matmul path: tight check against the plain-JAX reference.
    out_f32, ptt = cold_fusion_forward(unprojected_outs, params,
                                       matmul_dtype=jnp.float32)
    out_f32 = jax.block_until_ready(out_f32)
    assert ptt is None
    assert out_f32.shape == (B, S, vocab)
    assert jnp.allclose(out_f32, ref, atol=5e-3, rtol=5e-3), \
        float(jnp.max(jnp.abs(out_f32 - ref)))

    # f32 path with a tile_v that does NOT divide V: exercises vocab padding and
    # the multi-tile vocab reduction in phase 1.
    out_pad, _ = cold_fusion_forward(unprojected_outs, params,
                                     tile_v=768, matmul_dtype=jnp.float32)
    out_pad = jax.block_until_ready(out_pad)
    assert jnp.allclose(out_pad, ref, atol=5e-3, rtol=5e-3), \
        float(jnp.max(jnp.abs(out_pad - ref)))

    # bf16 matmul-operand path (default, per perf review): mixed-precision tolerance.
    out_bf16, _ = cold_fusion_forward(unprojected_outs, params)
    out_bf16 = jax.block_until_ready(out_bf16)
    assert bool(jnp.all(jnp.isfinite(out_bf16)))
    assert jnp.allclose(out_bf16, ref, atol=0.25, rtol=0.05), \
        float(jnp.max(jnp.abs(out_bf16 - ref)))

    print("KERNEL_OK")
</pallas_src>

<mosaic_0001>
module attributes {stable_mosaic.version = 11 : i64} {
  func.func @_phase1_kernel(%arg0: i32, %arg1: i32, %arg2: memref<16x32xf32, #tpu.memory_space<vmem>>, %arg3: memref<32x1024xf32, #tpu.memory_space<vmem>>, %arg4: memref<1x1024xf32, #tpu.memory_space<vmem>>, %arg5: memref<1024x128xf32, #tpu.memory_space<vmem>>, %arg6: memref<1x128xf32, #tpu.memory_space<vmem>>, %arg7: memref<16x48xf32, #tpu.memory_space<vmem>>, %arg8: memref<48x128xf32, #tpu.memory_space<vmem>>, %arg9: memref<128x128xf32, #tpu.memory_space<vmem>>, %arg10: memref<1x128xf32, #tpu.memory_space<vmem>>, %arg11: memref<16x128xf32, #tpu.memory_space<vmem>>, %arg12: memref<16x128xf32, #tpu.memory_space<vmem>>, %arg13: memref<16x1xf32, #tpu.memory_space<vmem>>) attributes {dimension_semantics = [#tpu.dimension_semantics<parallel>, #tpu.dimension_semantics<arbitrary>], iteration_bounds = array<i64: 1, 1>, scalar_prefetch = 0 : i64, scratch_operands = 2 : i64, tpu.core_type = #tpu.core_type<tc>, window_params = [{transform_indices = @transform_0, window_bounds = array<i64: 16, 32>}, {transform_indices = @transform_1, window_bounds = array<i64: 32, 1024>}, {transform_indices = @transform_2, window_bounds = array<i64: 1, 1024>}, {transform_indices = @transform_3, window_bounds = array<i64: 1024, 128>}, {pipeline_mode = #tpu.pipeline_mode<synchronous>, transform_indices = @transform_4, window_bounds = array<i64: 1, 128>}, {transform_indices = @transform_5, window_bounds = array<i64: 16, 48>}, {pipeline_mode = #tpu.pipeline_mode<synchronous>, transform_indices = @transform_6, window_bounds = array<i64: 48, 128>}, {pipeline_mode = #tpu.pipeline_mode<synchronous>, transform_indices = @transform_7, window_bounds = array<i64: 128, 128>}, {pipeline_mode = #tpu.pipeline_mode<synchronous>, transform_indices = @transform_8, window_bounds = array<i64: 1, 128>}, {transform_indices = @transform_9, window_bounds = array<i64: 16, 128>}]} {
    %c0_i32 = arith.constant 0 : i32
    %0 = arith.cmpi eq, %arg1, %c0_i32 : i32
    %1 = arith.extui %0 : i1 to i32
    %c0_i32_0 = arith.constant 0 : i32
    %2 = arith.cmpi ne, %1, %c0_i32_0 : i32
    scf.if %2 {
      %cst_20 = arith.constant 0.000000e+00 : f32
      %22 = vector.broadcast %cst_20 : f32 to vector<16x128xf32>
      %c0_21 = arith.constant 0 : index
      %c0_22 = arith.constant 0 : index
      %23 = vector.load %arg12[%c0_21, %c0_22] : memref<16x128xf32, #tpu.memory_space<vmem>>, vector<16x128xf32>
      tpu.vector_store %arg12[%c0_21, %c0_22], %22 {strides = array<i32>} : memref<16x128xf32, #tpu.memory_space<vmem>>, vector<16x128xf32>,
      %cst_23 = arith.constant 0xFF800000 : f32
      %24 = vector.broadcast %cst_23 : f32 to vector<16x1xf32>
      %c0_24 = arith.constant 0 : index
      %c0_25 = arith.constant 0 : index
      %25 = vector.load %arg13[%c0_24, %c0_25] : memref<16x1xf32, #tpu.memory_space<vmem>>, vector<16x1xf32>
      tpu.vector_store %arg13[%c0_24, %c0_25], %24 {strides = array<i32>} : memref<16x1xf32, #tpu.memory_space<vmem>>, vector<16x1xf32>,
    } else {
    }
    %c0 = arith.constant 0 : index
    %c0_1 = arith.constant 0 : index
    %3 = vector.load %arg2[%c0, %c0_1] : memref<16x32xf32, #tpu.memory_space<vmem>>, vector<16x32xf32>
    %c0_2 = arith.constant 0 : index
    %c0_3 = arith.constant 0 : index
    %4 = vector.load %arg3[%c0_2, %c0_3] : memref<32x1024xf32, #tpu.memory_space<vmem>>, vector<32x1024xf32>
    %cst = arith.constant dense<0.000000e+00> : vector<16x1024xf32>
    %5 = tpu.matmul %3, %4, %cst {dimension_numbers = #tpu.dot_dimension_numbers<[1], [0], [0], [1], [0, 0, 1, 1], [], []>} : vector<16x32xf32>, vector<32x1024xf32>, vector<16x1024xf32> -> vector<16x1024xf32>
    %c0_4 = arith.constant 0 : index
    %c0_5 = arith.constant 0 : index
    %6 = vector.load %arg4[%c0_4, %c0_5] : memref<1x1024xf32, #tpu.memory_space<vmem>>, vector<1x1024xf32>
    %7 = vector.broadcast %6 : vector<1x1024xf32> to vector<16x1024xf32>
    %8 = arith.addf %5, %7 : vector<16x1024xf32>
    %c0_6 = arith.constant 0 : index
    %c0_7 = arith.constant 0 : index
    %9 = vector.load %arg12[%c0_6, %c0_7] : memref<16x128xf32, #tpu.memory_space<vmem>>, vector<16x128xf32>
    %c0_8 = arith.constant 0 : index
    %c0_9 = arith.constant 0 : index
    %10 = vector.load %arg5[%c0_8, %c0_9] : memref<1024x128xf32, #tpu.memory_space<vmem>>, vector<1024x128xf32>
    %cst_10 = arith.constant dense<0.000000e+00> : vector<16x128xf32>
    %11 = tpu.matmul %8, %10, %cst_10 {dimension_numbers = #tpu.dot_dimension_numbers<[1], [0], [0], [1], [0, 0, 1, 1], [], []>} : vector<16x1024xf32>, vector<1024x128xf32>, vector<16x128xf32> -> vector<16x128xf32>
    %12 = arith.addf %9, %11 : vector<16x128xf32>
    %c0_11 = arith.constant 0 : index
    %c0_12 = arith.constant 0 : index
    %13 = vector.load %arg12[%c0_11, %c0_12] : memref<16x128xf32, #tpu.memory_space<vmem>>, vector<16x128xf32>
    tpu.vector_store %arg12[%c0_11, %c0_12], %12 {strides = array<i32>} : memref<16x128xf32, #tpu.memory_space<vmem>>, vector<16x128xf32>,
    %c0_13 = arith.constant 0 : index
    %c0_14 = arith.constant 0 : index
    %14 = vector.load %arg13[%c0_13, %c0_14] : memref<16x1xf32, #tpu.memory_space<vmem>>, vector<16x1xf32>
    %cst_15 = arith.constant dense<0xFF800000> : vector<16xf32>
    %15 = vector.multi_reduction <maximumf>, %8, %cst_15 [1] : vector<16x1024xf32> to vector<16xf32>
    %16 = vector.shape_cast %15 : vector<16xf32> to vector<16x1xf32>
    %17 = arith.maximumf %14, %16 : vector<16x1xf32>
    %c0_16 = arith.constant 0 : index
    %c0_17 = arith.constant 0 : index
    %18 = vector.load %arg13[%c0_16, %c0_17] : memref<16x1xf32, #tpu.memory_space<vmem>>, vector<16x1xf32>
    tpu.vector_store %arg13[%c0_16, %c0_17], %17 {strides = array<i32>} : memref<16x1xf32, #tpu.memory_space<vmem>>, vector<16x1xf32>,
    %c0_i32_18 = arith.constant 0 : i32
    %19 = arith.cmpi eq, %arg1, %c0_i32_18 : i32
    %20 = arith.extui %19 : i1 to i32
    %c0_i32_19 = arith.constant 0 : i32
    %21 = arith.cmpi ne, %20, %c0_i32_19 : i32
    scf.if %21 {
      %c0_20 = arith.constant 0 : index
      %c0_21 = arith.constant 0 : index
      %22 = vector.load %arg12[%c0_20, %c0_21] : memref<16x128xf32, #tpu.memory_space<vmem>>, vector<16x128xf32>
      %c0_22 = arith.constant 0 : index
      %c0_23 = arith.constant 0 : index
      %23 = vector.load %arg13[%c0_22, %c0_23] : memref<16x1xf32, #tpu.memory_space<vmem>>, vector<16x1xf32>
      %c0_24 = arith.constant 0 : index
      %c0_25 = arith.constant 0 : index
      %24 = vector.load %arg6[%c0_24, %c0_25] : memref<1x128xf32, #tpu.memory_space<vmem>>, vector<1x128xf32>
      %25 = vector.broadcast %23 : vector<16x1xf32> to vector<16x128xf32>
      %26 = vector.broadcast %24 : vector<1x128xf32> to vector<16x128xf32>
      %27 = arith.mulf %25, %26 : vector<16x128xf32>
      %28 = arith.subf %22, %27 : vector<16x128xf32>
      %cst_26 = arith.constant 0.000000e+00 : f32
      %29 = vector.broadcast %cst_26 : f32 to vector<16x128xf32>
      %30 = arith.maximumf %28, %29 : vector<16x128xf32>
      %c0_27 = arith.constant 0 : index
      %c0_28 = arith.constant 0 : index
      %31 = vector.load %arg7[%c0_27, %c0_28] : memref<16x48xf32, #tpu.memory_space<vmem>>, vector<16x48xf32>
      %c0_29 = arith.constant 0 : index
      %c0_30 = arith.constant 0 : index
      %32 = vector.load %arg8[%c0_29, %c0_30] : memref<48x128xf32, #tpu.memory_space<vmem>>, vector<48x128xf32>
      %cst_31 = arith.constant dense<0.000000e+00> : vector<16x128xf32>
      %33 = tpu.matmul %31, %32, %cst_31 {dimension_numbers = #tpu.dot_dimension_numbers<[1], [0], [0], [1], [0, 0, 1, 1], [], []>} : vector<16x48xf32>, vector<48x128xf32>, vector<16x128xf32> -> vector<16x128xf32>
      %c0_32 = arith.constant 0 : index
      %c0_33 = arith.constant 0 : index
      %34 = vector.load %arg9[%c0_32, %c0_33] : memref<128x128xf32, #tpu.memory_space<vmem>>, vector<128x128xf32>
      %cst_34 = arith.constant dense<0.000000e+00> : vector<16x128xf32>
      %35 = tpu.matmul %30, %34, %cst_34 {dimension_numbers = #tpu.dot_dimension_numbers<[1], [0], [0], [1], [0, 0, 1, 1], [], []>} : vector<16x128xf32>, vector<128x128xf32>, vector<16x128xf32> -> vector<16x128xf32>
      %36 = arith.addf %33, %35 : vector<16x128xf32>
      %c0_35 = arith.constant 0 : index
      %c0_36 = arith.constant 0 : index
      %37 = vector.load %arg10[%c0_35, %c0_36] : memref<1x128xf32, #tpu.memory_space<vmem>>, vector<1x128xf32>
      %38 = vector.broadcast %37 : vector<1x128xf32> to vector<16x128xf32>
      %39 = arith.addf %36, %38 : vector<16x128xf32>
      %cst_37 = arith.constant 0.000000e+00 : f32
      %40 = vector.broadcast %cst_37 : f32 to vector<16x128xf32>
      %41 = arith.subf %40, %39 : vector<16x128xf32>
      %42 = math.exp %41 : vector<16x128xf32>
      %cst_38 = arith.constant 1.000000e+00 : f32
      %43 = vector.broadcast %cst_38 : f32 to vector<16x128xf32>
      %44 = arith.addf %43, %42 : vector<16x128xf32>
      %cst_39 = arith.constant 1.000000e+00 : f32
      %45 = vector.broadcast %cst_39 : f32 to vector<16x128xf32>
      %46 = arith.divf %45, %44 : vector<16x128xf32>
      %47 = arith.mulf %46, %30 : vector<16x128xf32>
      %c0_40 = arith.constant 0 : index
      %c0_41 = arith.constant 0 : index
      %48 = vector.load %arg11[%c0_40, %c0_41] : memref<16x128xf32, #tpu.memory_space<vmem>>, vector<16x128xf32>
      tpu.vector_store %arg11[%c0_40, %c0_41], %47 {strides = array<i32>} : memref<16x128xf32, #tpu.memory_space<vmem>>, vector<16x128xf32>,
    } else {
    }
    return
  }
  func.func @transform_0(%arg0: i32, %arg1: i32) -> (i32, i32) {
    %c0_i32 = arith.constant 0 : i32
    %c0_i32_0 = arith.constant 0 : i32
    return %arg0, %c0_i32 : i32, i32
  }
  func.func @transform_1(%arg0: i32, %arg1: i32) -> (i32, i32) {
    %c0_i32 = arith.constant 0 : i32
    %c0_i32_0 = arith.constant 0 : i32
    return %c0_i32, %arg1 : i32, i32
  }
  func.func @transform_2(%arg0: i32, %arg1: i32) -> (i32, i32) {
    %c0_i32 = arith.constant 0 : i32
    %c0_i32_0 = arith.constant 0 : i32
    return %c0_i32, %arg1 : i32, i32
  }
  func.func @transform_3(%arg0: i32, %arg1: i32) -> (i32, i32) {
    %c0_i32 = arith.constant 0 : i32
    %c0_i32_0 = arith.constant 0 : i32
    return %arg1, %c0_i32 : i32, i32
  }
  func.func @transform_4(%arg0: i32, %arg1: i32) -> (i32, i32) {
    %c0_i32 = arith.constant 0 : i32
    %c0_i32_0 = arith.constant 0 : i32
    %c0_i32_1 = arith.constant 0 : i32
    return %c0_i32, %c0_i32_0 : i32, i32
  }
  func.func @transform_5(%arg0: i32, %arg1: i32) -> (i32, i32) {
    %c0_i32 = arith.constant 0 : i32
    %c0_i32_0 = arith.constant 0 : i32
    return %arg0, %c0_i32 : i32, i32
  }
  func.func @transform_6(%arg0: i32, %arg1: i32) -> (i32, i32) {
    %c0_i32 = arith.constant 0 : i32
    %c0_i32_0 = arith.constant 0 : i32
    %c0_i32_1 = arith.constant 0 : i32
    return %c0_i32, %c0_i32_0 : i32, i32
  }
  func.func @transform_7(%arg0: i32, %arg1: i32) -> (i32, i32) {
    %c0_i32 = arith.constant 0 : i32
    %c0_i32_0 = arith.constant 0 : i32
    %c0_i32_1 = arith.constant 0 : i32
    return %c0_i32, %c0_i32_0 : i32, i32
  }
  func.func @transform_8(%arg0: i32, %arg1: i32) -> (i32, i32) {
    %c0_i32 = arith.constant 0 : i32
    %c0_i32_0 = arith.constant 0 : i32
    %c0_i32_1 = arith.constant 0 : i32
    return %c0_i32, %c0_i32_0 : i32, i32
  }
  func.func @transform_9(%arg0: i32, %arg1: i32) -> (i32, i32) {
    %c0_i32 = arith.constant 0 : i32
    %c0_i32_0 = arith.constant 0 : i32
    return %arg0, %c0_i32 : i32, i32
  }
}

</mosaic_0001>

<bundles_post_ra>
// kernel: tpu_custom_call.1
= control target key start
LH: loop header
LB: loop body
LE: loop exit
PB: predicated region body
PF: predicated region fallthrough
CT: control target
= control target key end

     0   :  { %14 = vsyncpa [#allocation5], 0  ;;  %s1317_s0 = inlined_call_operand.hbm [shape: f32[16,32], index: 0, kind: input, shape index: {}]   ;;  %s1318_s1 = inlined_call_operand.hbm [shape: f32[32,1024], index: 1, kind: input, shape index: {}]   ;;  %s1319_s2 = inlined_call_operand.hbm [shape: f32[1,1024], index: 2, kind: input, shape index: {}]   ;;  %s1320_s3 = inlined_call_operand.hbm [shape: f32[1024,128], index: 3, kind: input, shape index: {}]   ;;  %s1321_s4 = inlined_call_operand.vmem [shape: f32[1,128], index: 4, kind: input, shape index: {}]   ;;  %s1322_s5 = inlined_call_operand.hbm [shape: f32[16,48], index: 5, kind: input, shape index: {}]   ;;  %s1323_s6 = inlined_call_operand.hbm [shape: f32[48,128], index: 6, kind: input, shape index: {}]   ;;  %s1324_s7 = inlined_call_operand.hbm [shape: f32[128,128], index: 7, kind: input, shape index: {}]   ;;  %s1325_s8 = inlined_call_operand.vmem [shape: f32[1,128], index: 8, kind: input, shape index: {}]   ;;  %s1326_s9 = inlined_call_operand.hbm [shape: f32[16,128], index: 9, kind: output, shape index: {}]  }
   0x1   :  { %15 = vsyncpa [#allocation8], 0 }
   0x2   :  { %16 = vsyncpa [#allocation11], 0 }
   0x3   :  { %17 = vsyncpa [#allocation14], 0  ;;  %s36_s11 = sshll.u32 %s1318_s1, 4  ;;  %s37_s11 = int_to_ptr.hbm [resolvable:$true] %s36_s11 }
   0x4   :  { %18 = vsyncpa [#allocation6], 0  ;;  %s1155_s12 = smov [#allocation7]   ;;  %s1156_s14 = smov 1024  }
   0x5   :  { %s38_s13 = sshll.u32 %s1155_s12, 4  ;;  %s1157_s15 = smov 64   ;;  %s39_s13 = int_to_ptr.vmem [resolvable:$true] %s38_s13 }
   0x6   :  { %44 = dma.hbm_to_vmem [thread:$0]  %s37_s11, 4096, %s39_s13, [#allocation8], %s1156_s14, %s1156_s14, %s1157_s15  }
   0x7   :  { %s60_s18 = sshll.u32 %s1320_s3, 4  ;;  %s1158_s19 = smov [#allocation10]   ;;  %s61_s18 = int_to_ptr.hbm [resolvable:$true] %s60_s18 }
   0x8   :  { %s62_s20 = sshll.u32 %s1158_s19, 4  ;;  %s88_s23 = sshll.u32 %s1323_s6, 4  ;;  %s63_s20 = int_to_ptr.vmem [resolvable:$true] %s62_s20  ;;  %s89_s23 = int_to_ptr.hbm [resolvable:$true] %s88_s23 }
   0x9   :  { %s1159_s1 = smov 128   ;;  %s1160_s24 = smov 8  }
   0xa   :  { %68 = dma.hbm_to_vmem [thread:$0]  %s61_s18, 16384, %s63_s20, [#allocation11], %s1159_s1, %s1159_s1, %s1160_s24  }
   0xb   :  { %s23_s27 = sshll.u32 %s1317_s0, 4  ;;  %s1161_s3 = smov [#allocation13]   ;;  %s24_s27 = int_to_ptr.hbm [resolvable:$true] %s23_s27 }
   0xc   :  { %s90_s28 = sshll.u32 %s1161_s3, 4  ;;  %s1162_s6 = smov [#allocation4]   ;;  %s91_s28 = int_to_ptr.vmem [resolvable:$true] %s90_s28 }
   0xd   :  { %96 = dma.hbm_to_vmem [thread:$0]  %s89_s23, 768, %s91_s28, [#allocation14], %s1159_s1, %s1159_s1, %s1160_s24  }
   0xe   :  { %s25_s29 = sshll.u32 %s1162_s6, 4  ;;  %s50_s11 = sshll.u32 %s1319_s2, 4  ;;  %s26_s29 = int_to_ptr.vmem [resolvable:$true] %s25_s29  ;;  %s51_s11 = int_to_ptr.hbm [resolvable:$true] %s50_s11 }
   0xf   :  { %31 = dma.hbm_to_vmem [thread:$0]  %s24_s27, 256, %s26_s29, [#allocation5], %s1159_s1, %s1159_s1, %s1160_s24  }
  0x10   :  { %s75_s13 = sshll.u32 %s1322_s5, 4  ;;  %s1163_s14 = smov [#allocation9]   ;;  %s76_s13 = int_to_ptr.hbm [resolvable:$true] %s75_s13 }
  0x11   :  { %s52_s15 = sshll.u32 %s1163_s14, 4  ;;  %s1164_s16 = smov [#allocation12]   ;;  %s53_s15 = int_to_ptr.vmem [resolvable:$true] %s52_s15 }
  0x12   :  { %55 = dma.hbm_to_vmem [thread:$0]  %s51_s11, 128, %s53_s15, [#allocation8]  }
  0x13   :  { %s77_s17 = sshll.u32 %s1164_s16, 4  ;;  %s101_s2 = sshll.u32 %s1324_s7, 4  ;;  %s78_s17 = int_to_ptr.vmem [resolvable:$true] %s77_s17  ;;  %s102_s2 = int_to_ptr.hbm [resolvable:$true] %s101_s2 }
  0x14   :  { %83 = dma.hbm_to_vmem [thread:$0]  %s76_s13, 256, %s78_s17, [#allocation11], %s1159_s1, %s1159_s1, %s1160_s24  }
  0x15   :  { %s1165_s20 = smov [#allocation15]  }
  0x16   :  { %s103_s21 = sshll.u32 %s1165_s20, 4  ;;  %s104_s21 = int_to_ptr.vmem [resolvable:$true] %s103_s21 }
  0x17   :  { %109 = dma.hbm_to_vmem [thread:$0]  %s102_s2, 2048, %s104_s21, [#allocation14], %s1159_s1, %s1159_s1, %s1160_s24  }
  0x18   :  { %1145 = dma.done.wait [#allocation5], 256  }
  0x19   :  { %1146 = vsyncadd [#allocation5], 4294967040 }
  0x1a   :  { %1147 = dma.done.wait [#allocation8], 4224  }
  0x1b   :  { %1148 = vsyncadd [#allocation8], 4294963072 }
  0x1c   :  { %1149 = dma.done.wait [#allocation11], 16640  }
  0x1d   :  { %1150 = vsyncadd [#allocation11], 4294950656 }
  0x1e   :  { %1151 = dma.done.wait [#allocation14], 2816  }
  0x1f   :  { %1152 = vsyncadd [#allocation14], 4294964480  ;;  %v175_v0 = vld [vmem:[#allocation7 + $0xc0] sm:$0xff]  ;;  %v178_v2 = vld [vmem:[#allocation7 + $0xd8] sm:$0xff]  ;;  %vm201_vm0 = vcmask 261120   ;;  %vm146_vm1 = vcmask 7168  }
  0x20   :  { %v167_v1 = vld [vmem:[#allocation7 + $0x80] sm:$0xff]  ;;  %220 = vmatpush.msra.mxu2 %v175_v0  ;;  %289 = vmatpush.msra.mxu3 %v178_v2  ;;  %v170_v3 = vld [vmem:[#allocation7 + $0x98] sm:$0xff]  ;;  %v176_v5 = vld [vmem:[#allocation7 + $0xc8] sm:$0xff]  ;;  %vm809_vm2 = vcmask 392192   ;;  %s893_s27 = sshll.u32 %s1326_s9, 4  ;;  %s894_s27 = int_to_ptr.hbm [resolvable:$true] %s893_s27 }
  0x21   :  { %v159_v4 = vld [vmem:[#allocation7 + $0x40] sm:$0xff]  ;;  %v162_v6 = vld [vmem:[#allocation7 + $0x58] sm:$0xff]  ;;  %v168_v7 = vld [vmem:[#allocation7 + $0x88] sm:$0xff]  ;;  %243 = vmatpush.msra.mxu1 %v176_v5 }
  0x22   :  { %221 = vmatpush.msra.mxu2 %v167_v1  ;;  %290 = vmatpush.msra.mxu3 %v170_v3  ;;  %v151_v8 = vld [vmem:[#allocation7] sm:$0xff]  ;;  %v154_v9 = vld [vmem:[#allocation7 + $0x18] sm:$0xff]  ;;  %v1255_v10 = vld [vmem:[#allocation4] sm:$0xff] }
  0x23   :  { %v177_v11 = vld [vmem:[#allocation7 + $0xd0] sm:$0xff]  ;;  %244 = vmatpush.msra.mxu1 %v168_v7  ;;  %v160_v12 = vld [vmem:[#allocation7 + $0x48] sm:$0xff]  ;;  %v182_v13 = vld [vmem:[#allocation7 + $0xf8] sm:$0xff] }
  0x24   :  { %222 = vmatpush.msra.mxu2 %v159_v4  ;;  %291 = vmatpush.msra.mxu3 %v162_v6  ;;  %v179_v14 = vld [vmem:[#allocation7 + $0xe0] sm:$0xff]  ;;  %v169_v15 = vld [vmem:[#allocation7 + $0x90] sm:$0xff]  ;;  %v152_v16 = vld [vmem:[#allocation7 + $0x8] sm:$0xff] }
  0x25   :  { %245 = vmatpush.msra.mxu1 %v160_v12  ;;  %v174_v17 = vld [vmem:[#allocation7 + $0xb8] sm:$0xff]  ;;  %v161_v18 = vld [vmem:[#allocation7 + $0x50] sm:$0xff]  ;;  %v180_v19 = vld [vmem:[#allocation7 + $0xe8] sm:$0xff]  ;;  %312 = vmatpush.msra.mxu0 %v179_v14 }
  0x26   :  { %223 = vmatpush.msra.mxu2 %v151_v8  ;;  %292 = vmatpush.msra.mxu3 %v154_v9  ;;  %v166_v20 = vld [vmem:[#allocation7 + $0x78] sm:$0xff]  ;;  %v171_v21 = vld [vmem:[#allocation7 + $0xa0] sm:$0xff]  ;;  %v153_v22 = vld [vmem:[#allocation7 + $0x10] sm:$0xff] }
  0x27   :  { %909 = vmatmul.msk.f32.vlgmr.msra.gmra.mxu2 %vm201_vm0, %v1255_v10  ;;  %915 = vmatmul.msk.f32.vlgmr.msra.gmra.mxu3 %vm201_vm0, %v1255_v10  ;;  %v172_v23 = vld [vmem:[#allocation7 + $0xa8] sm:$0xff]  ;;  %v1263_v24 = vld [vmem:[#allocation4 + $0x8] sm:$0xff]  ;;  %v181_v25 = vld [vmem:[#allocation7 + $0xf0] sm:$0xff] }
  0x28   :  { %266 = vmatpush.msrb.mxu2 %v177_v11  ;;  %381 = vmatpush.msrb.mxu3 %v182_v13  ;;  %v158_v26 = vld [vmem:[#allocation7 + $0x38] sm:$0xff]  ;;  %v164_v27 = vld [vmem:[#allocation7 + $0x68] sm:$0xff]  ;;  %v163_v28 = vld [vmem:[#allocation7 + $0x60] sm:$0xff] }
  0x29   :  { %246 = vmatpush.msra.mxu1 %v152_v16  ;;  %313 = vmatpush.msra.mxu0 %v171_v21  ;;  %v173_v29 = vld [vmem:[#allocation7 + $0xb0] sm:$0xff]  ;;  %v155_v30 = vld [vmem:[#allocation7 + $0x20] sm:$0xff]  ;;  %v156_v31 = vld [vmem:[#allocation7 + $0x28] sm:$0xff] }
  0x2a   :  { %267 = vmatpush.msrb.mxu2 %v169_v15  ;;  %911 = vmatmul.msk.f32.vlgmr.msra.gmra.mxu1 %vm201_vm0, %v1255_v10  ;;  %v457_v32 = vld [vmem:[#allocation10 + $0x1f8] sm:$0xff]  ;;  %v165_v33 = vld [vmem:[#allocation7 + $0x70] sm:$0xff]  ;;  %v456_v36 = vld [vmem:[#allocation10 + $0x1f0] sm:$0xff] }
  0x2b   :  { %382 = vmatpush.msrb.mxu3 %v174_v17  ;;  %335 = vmatpush.msrb.mxu1 %v180_v19  ;;  %v409_v34 = vld [vmem:[#allocation10 + $0x78] sm:$0xff]  ;;  %v157_v37 = vld [vmem:[#allocation7 + $0x30] sm:$0xff]  ;;  %v408_v38 = vld [vmem:[#allocation10 + $0x70] sm:$0xff] }
  0x2c   :  { %268 = vmatpush.msrb.mxu2 %v161_v18  ;;  %314 = vmatpush.msra.mxu0 %v163_v28  ;;  %v425_v35 = vld [vmem:[#allocation10 + $0xf8] sm:$0xff]  ;;  %v424_v39 = vld [vmem:[#allocation10 + $0xf0] sm:$0xff]  ;;  %v407_v41 = vld [vmem:[#allocation10 + $0x68] sm:$0xff] }
  0x2d   :  { %383 = vmatpush.msrb.mxu3 %v166_v20  ;;  %336 = vmatpush.msrb.mxu1 %v172_v23  ;;  %v441_v40 = vld [vmem:[#allocation10 + $0x178] sm:$0xff]  ;;  %v455_v42 = vld [vmem:[#allocation10 + $0x1e8] sm:$0xff]  ;;  %v440_v43 = vld [vmem:[#allocation10 + $0x170] sm:$0xff] }
  0x2e   :  { %269 = vmatpush.msrb.mxu2 %v153_v22  ;;  %315 = vmatpush.msra.mxu0 %v155_v30  ;;  %v423_v44 = vld [vmem:[#allocation10 + $0xe8] sm:$0xff]  ;;  %v406_v45 = vld [vmem:[#allocation10 + $0x60] sm:$0xff]  ;;  %v405_v49 = vld [vmem:[#allocation10 + $0x58] sm:$0xff] }
  0x2f   :  { %910 = vmatmul.msk.f32.gmra.mxu2 %vm201_vm0, %v1263_v24  ;;  %916 = vmatmul.msk.f32.gmra.mxu3 %vm201_vm0, %v1263_v24  ;;  %v439_v46 = vld [vmem:[#allocation10 + $0x168] sm:$0xff]  ;;  %v422_v47 = vld [vmem:[#allocation10 + $0xe0] sm:$0xff]  ;;  %v421_v50 = vld [vmem:[#allocation10 + $0xd8] sm:$0xff] }
  0x30   :  { %358 = vmatpush.msra.mxu2 %v181_v25  ;;  %384 = vmatpush.msrb.mxu3 %v158_v26  ;;  %v454_v48 = vld [vmem:[#allocation10 + $0x1e0] sm:$0xff]  ;;  %v453_v52 = vld [vmem:[#allocation10 + $0x1d8] sm:$0xff]  ;;  %v404_v53 = vld [vmem:[#allocation10 + $0x50] sm:$0xff] }
  0x31   :  { %337 = vmatpush.msrb.mxu1 %v164_v27  ;;  %917 = vmatmul.msk.f32.vlgmr.msra.gmra.mxu0 %vm201_vm0, %v1255_v10  ;;  %v438_v51 = vld [vmem:[#allocation10 + $0x160] sm:$0xff]  ;;  %v420_v54 = vld [vmem:[#allocation10 + $0xd0] sm:$0xff]  ;;  %v437_v55 = vld [vmem:[#allocation10 + $0x158] sm:$0xff] }
  0x32   :  { %359 = vmatpush.msra.mxu2 %v173_v29  ;;  %591 = vmatpush.msra.mxu3 %v457_v32  ;;  %v403_v56 = vld [vmem:[#allocation10 + $0x48] sm:$0xff]  ;;  %v436_v58 = vld [vmem:[#allocation10 + $0x150] sm:$0xff]  ;;  %v402_v60 = vld [vmem:[#allocation10 + $0x40] sm:$0xff] }
  0x33   :  { %912 = vmatmul.msk.f32.gmra.mxu1 %vm201_vm0, %v1263_v24  ;;  %522 = vmatpush.msrb.mxu0 %v409_v34  ;;  %v419_v57 = vld [vmem:[#allocation10 + $0xc8] sm:$0xff]  ;;  %v452_v59 = vld [vmem:[#allocation10 + $0x1d0] sm:$0xff]  ;;  %v418_v61 = vld [vmem:[#allocation10 + $0xc0] sm:$0xff] }
  0x34   :  { %338 = vmatpush.msrb.mxu1 %v156_v31  ;;  %360 = vmatpush.msra.mxu2 %v165_v33  ;;  %v451_v62 = vld [vmem:[#allocation10 + $0x1c8] sm:$0xff]  ;;  %v401_v63 = vld [vmem:[#allocation10 + $0x38] sm:$0xff]  ;;  %v450_v2 = vld [vmem:[#allocation10 + $0x1c0] sm:$0xff] }
  0x35   :  { %592 = vmatpush.msra.mxu3 %v456_v36  ;;  %523 = vmatpush.msrb.mxu0 %v408_v38  ;;  %v417_v0 = vld [vmem:[#allocation10 + $0xb8] sm:$0xff]  ;;  %v435_v1 = vld [vmem:[#allocation10 + $0x148] sm:$0xff]  ;;  %v400_v3 = vld [vmem:[#allocation10 + $0x30] sm:$0xff] }
  0x36   :  { %545 = vmatpush.msra.mxu1 %v425_v35  ;;  %361 = vmatpush.msra.mxu2 %v157_v37  ;;  %v416_v4 = vld [vmem:[#allocation10 + $0xb0] sm:$0xff]  ;;  %v434_v5 = vld [vmem:[#allocation10 + $0x140] sm:$0xff]  ;;  %v449_v6 = vld [vmem:[#allocation10 + $0x1b8] sm:$0xff] }
  0x37   :  { %913 = vmatmul.msk.f32.vlgmr.msrb.gmra.mxu2 %vm201_vm0, %v1255_v10  ;;  %923 = vmatmul.msk.f32.vlgmr.msrb.gmra.mxu3 %vm201_vm0, %v1255_v10  ;;  %v399_v7 = vld [vmem:[#allocation10 + $0x28] sm:$0xff]  ;;  %v433_v9 = vld [vmem:[#allocation10 + $0x138] sm:$0xff]  ;;  %v448_v11 = vld [vmem:[#allocation10 + $0x1b0] sm:$0xff] }
  0x38   :  { %546 = vmatpush.msra.mxu1 %v424_v39  ;;  %568 = vmatpush.msrb.mxu2 %v441_v40  ;;  %v415_v8 = vld [vmem:[#allocation10 + $0xa8] sm:$0xff]  ;;  %v398_v12 = vld [vmem:[#allocation10 + $0x20] sm:$0xff]  ;;  %v397_v14 = vld [vmem:[#allocation10 + $0x18] sm:$0xff] }
  0x39   :  { %524 = vmatpush.msrb.mxu0 %v407_v41  ;;  %593 = vmatpush.msra.mxu3 %v455_v42  ;;  %v414_v13 = vld [vmem:[#allocation10 + $0xa0] sm:$0xff]  ;;  %v432_v15 = vld [vmem:[#allocation10 + $0x130] sm:$0xff]  ;;  %v413_v16 = vld [vmem:[#allocation10 + $0x98] sm:$0xff] }
  0x3a   :  { %569 = vmatpush.msrb.mxu2 %v440_v43  ;;  %918 = vmatmul.msk.f32.gmra.mxu0 %vm201_vm0, %v1263_v24  ;;  %v446_v17 = vld [vmem:[#allocation10 + $0x1a0] sm:$0xff]  ;;  %v396_v18 = vld [vmem:[#allocation10 + $0x10] sm:$0xff]  ;;  %v431_v19 = vld [vmem:[#allocation10 + $0x128] sm:$0xff] }
  0x3b   :  { %919 = vmatmul.msk.f32.vlgmr.msrb.gmra.mxu1 %vm201_vm0, %v1255_v10  ;;  %525 = vmatpush.msrb.mxu0 %v406_v45  ;;  %v412_v20 = vld [vmem:[#allocation10 + $0x90] sm:$0xff]  ;;  %v445_v21 = vld [vmem:[#allocation10 + $0x198] sm:$0xff]  ;;  %v395_v22 = vld [vmem:[#allocation10 + $0x8] sm:$0xff] }
  0x3c   :  { %547 = vmatpush.msra.mxu1 %v423_v44  ;;  %570 = vmatpush.msrb.mxu2 %v439_v46  ;;  %v430_v23 = vld [vmem:[#allocation10 + $0x120] sm:$0xff]  ;;  %v411_v25 = vld [vmem:[#allocation10 + $0x88] sm:$0xff]  ;;  %v444_v26 = vld [vmem:[#allocation10 + $0x190] sm:$0xff] }
  0x3d   :  { %594 = vmatpush.msra.mxu3 %v454_v48  ;;  %526 = vmatpush.msrb.mxu0 %v405_v49  ;;  %v394_v27 = vld [vmem:[#allocation10] sm:$0xff]  ;;  %v429_v28 = vld [vmem:[#allocation10 + $0x118] sm:$0xff]  ;;  %v428_v30 = vld [vmem:[#allocation10 + $0x110] sm:$0xff] }
  0x3e   :  { %548 = vmatpush.msra.mxu1 %v422_v47  ;;  %571 = vmatpush.msrb.mxu2 %v438_v51  ;;  %v410_v29 = vld [vmem:[#allocation10 + $0x80] sm:$0xff]  ;;  %v472_v31 = vld [vmem:[#allocation10 + $0x270] sm:$0xff]  ;;  %v489_v32 = vld [vmem:[#allocation10 + $0x2f8] sm:$0xff] }
  0x3f   :  { %914 = vmatmul.msk.f32.gmra.mxu2 %vm201_vm0, %v1263_v24  ;;  %924 = vmatmul.msk.f32.gmra.mxu3 %vm201_vm0, %v1263_v24  ;;  %v427_v33 = vld [vmem:[#allocation10 + $0x108] sm:$0xff]  ;;  %v488_v36 = vld [vmem:[#allocation10 + $0x2f0] sm:$0xff]  ;;  %v426_v37 = vld [vmem:[#allocation10 + $0x100] sm:$0xff] }
  0x40   :  { %549 = vmatpush.msra.mxu1 %v421_v50  ;;  %595 = vmatpush.msra.mxu3 %v453_v52  ;;  %v443_v34 = vld [vmem:[#allocation10 + $0x188] sm:$0xff]  ;;  %v442_v38 = vld [vmem:[#allocation10 + $0x180] sm:$0xff]  ;;  %v505_v41 = vld [vmem:[#allocation10 + $0x378] sm:$0xff] }
  0x41   :  { %527 = vmatpush.msrb.mxu0 %v404_v53  ;;  %572 = vmatpush.msrb.mxu2 %v437_v55  ;;  %v471_v35 = vld [vmem:[#allocation10 + $0x268] sm:$0xff]  ;;  %v470_v39 = vld [vmem:[#allocation10 + $0x260] sm:$0xff]  ;;  %v521_v42 = vld [vmem:[#allocation10 + $0x3f8] sm:$0xff] }
  0x42   :  { %550 = vmatpush.msra.mxu1 %v420_v54  ;;  %596 = vmatpush.msra.mxu3 %v452_v59  ;;  %v487_v40 = vld [vmem:[#allocation10 + $0x2e8] sm:$0xff]  ;;  %v469_v43 = vld [vmem:[#allocation10 + $0x258] sm:$0xff]  ;;  %v486_v44 = vld [vmem:[#allocation10 + $0x2e0] sm:$0xff] }
  0x43   :  { %920 = vmatmul.msk.f32.gmra.mxu1 %vm201_vm0, %v1263_v24  ;;  %528 = vmatpush.msrb.mxu0 %v403_v56  ;;  %v504_v45 = vld [vmem:[#allocation10 + $0x370] sm:$0xff]  ;;  %v485_v48 = vld [vmem:[#allocation10 + $0x2d8] sm:$0xff]  ;;  %v503_v49 = vld [vmem:[#allocation10 + $0x368] sm:$0xff] }
  0x44   :  { %551 = vmatpush.msra.mxu1 %v419_v57  ;;  %573 = vmatpush.msrb.mxu2 %v436_v58  ;;  %v520_v46 = vld [vmem:[#allocation10 + $0x3f0] sm:$0xff]  ;;  %v519_v50 = vld [vmem:[#allocation10 + $0x3e8] sm:$0xff]  ;;  %v502_v53 = vld [vmem:[#allocation10 + $0x360] sm:$0xff] }
  0x45   :  { %529 = vmatpush.msrb.mxu0 %v402_v60  ;;  %597 = vmatpush.msra.mxu3 %v451_v62  ;;  %v468_v47 = vld [vmem:[#allocation10 + $0x250] sm:$0xff]  ;;  %v467_v51 = vld [vmem:[#allocation10 + $0x248] sm:$0xff]  ;;  %v518_v54 = vld [vmem:[#allocation10 + $0x3e0] sm:$0xff] }
  0x46   :  { %552 = vmatpush.msra.mxu1 %v418_v61  ;;  %574 = vmatpush.msrb.mxu2 %v435_v1  ;;  %v484_v52 = vld [vmem:[#allocation10 + $0x2d0] sm:$0xff]  ;;  %v466_v55 = vld [vmem:[#allocation10 + $0x240] sm:$0xff]  ;;  %v483_v56 = vld [vmem:[#allocation10 + $0x2c8] sm:$0xff] }
  0x47   :  { %921 = vmatmul.msk.f32.vlgmr.msra.gmra.mxu2 %vm201_vm0, %v1255_v10  ;;  %530 = vmatpush.msrb.mxu0 %v401_v63  ;;  %v447_v10 = vld [vmem:[#allocation10 + $0x1a8] sm:$0xff]  ;;  %v501_v57 = vld [vmem:[#allocation10 + $0x358] sm:$0xff]  ;;  %v482_v60 = vld [vmem:[#allocation10 + $0x2c0] sm:$0xff] }
  0x48   :  { %553 = vmatpush.msra.mxu1 %v417_v0  ;;  %598 = vmatpush.msra.mxu3 %v450_v2  ;;  %v517_v58 = vld [vmem:[#allocation10 + $0x3d8] sm:$0xff]  ;;  %v500_v61 = vld [vmem:[#allocation10 + $0x350] sm:$0xff]  ;;  %v499_v1 = vld [vmem:[#allocation10 + $0x348] sm:$0xff] }
  0x49   :  { %531 = vmatpush.msrb.mxu0 %v400_v3  ;;  %575 = vmatpush.msrb.mxu2 %v434_v5  ;;  %v465_v59 = vld [vmem:[#allocation10 + $0x238] sm:$0xff]  ;;  %v516_v62 = vld [vmem:[#allocation10 + $0x3d0] sm:$0xff]  ;;  %v515_v2 = vld [vmem:[#allocation10 + $0x3c8] sm:$0xff] }
  0x4a   :  { %554 = vmatpush.msra.mxu1 %v416_v4  ;;  %599 = vmatpush.msra.mxu3 %v449_v6  ;;  %v464_v63 = vld [vmem:[#allocation10 + $0x230] sm:$0xff]  ;;  %v481_v0 = vld [vmem:[#allocation10 + $0x2b8] sm:$0xff]  ;;  %v463_v3 = vld [vmem:[#allocation10 + $0x228] sm:$0xff] }
  0x4b   :  { %532 = vmatpush.msrb.mxu0 %v399_v7  ;;  %576 = vmatpush.msrb.mxu2 %v433_v9  ;;  %v480_v4 = vld [vmem:[#allocation10 + $0x2b0] sm:$0xff]  ;;  %v498_v5 = vld [vmem:[#allocation10 + $0x340] sm:$0xff]  ;;  %v497_v9 = vld [vmem:[#allocation10 + $0x338] sm:$0xff] }
  0x4c   :  { %555 = vmatpush.msra.mxu1 %v415_v8  ;;  %600 = vmatpush.msra.mxu3 %v448_v11  ;;  %v514_v6 = vld [vmem:[#allocation10 + $0x3c0] sm:$0xff]  ;;  %v479_v8 = vld [vmem:[#allocation10 + $0x2a8] sm:$0xff]  ;;  %v513_v11 = vld [vmem:[#allocation10 + $0x3b8] sm:$0xff] }
  0x4d   :  { %533 = vmatpush.msrb.mxu0 %v398_v12  ;;  %577 = vmatpush.msrb.mxu2 %v432_v15  ;;  %v462_v7 = vld [vmem:[#allocation10 + $0x220] sm:$0xff]  ;;  %v461_v12 = vld [vmem:[#allocation10 + $0x218] sm:$0xff]  ;;  %v460_v15 = vld [vmem:[#allocation10 + $0x210] sm:$0xff] }
  0x4e   :  { %556 = vmatpush.msra.mxu1 %v414_v13  ;;  %601 = vmatpush.msra.mxu3 %v447_v10  ;;  %v478_v13 = vld [vmem:[#allocation10 + $0x2a0] sm:$0xff]  ;;  %v496_v10 = vld [vmem:[#allocation10 + $0x330] sm:$0xff] }
  0x4f   :  { %922 = vmatmul.msk.f32.gmra.mxu2 %vm201_vm0, %v1263_v24  ;;  %534 = vmatpush.msrb.mxu0 %v397_v14  ;;  %v473_v24 = vld [vmem:[#allocation10 + $0x278] sm:$0xff]  ;;  %v512_v14 = vld [vmem:[#allocation10 + $0x3b0] sm:$0xff] }
  0x50   :  { %557 = vmatpush.msra.mxu1 %v413_v16  ;;  %602 = vmatpush.msra.mxu3 %v446_v17  ;;  %v477_v16 = vld [vmem:[#allocation10 + $0x298] sm:$0xff]  ;;  %v495_v17 = vld [vmem:[#allocation10 + $0x328] sm:$0xff] }
  0x51   :  { %535 = vmatpush.msrb.mxu0 %v396_v18  ;;  %578 = vmatpush.msrb.mxu2 %v431_v19  ;;  %v1291_v18 = vld [vmem:[#allocation9] sm:$0xff]  ;;  %v511_v19 = vld [vmem:[#allocation10 + $0x3a8] sm:$0xff] }
  0x52   :  { %558 = vmatpush.msra.mxu1 %v412_v20  ;;  %603 = vmatpush.msra.mxu3 %v445_v21  ;;  %v459_v20 = vld [vmem:[#allocation10 + $0x208] sm:$0xff]  ;;  %v476_v21 = vld [vmem:[#allocation10 + $0x290] sm:$0xff] }
  0x53   :  { %536 = vmatpush.msrb.mxu0 %v395_v22  ;;  %579 = vmatpush.msrb.mxu2 %v430_v23  ;;  %v494_v22 = vld [vmem:[#allocation10 + $0x320] sm:$0xff] }
  0x54   :  { %559 = vmatpush.msra.mxu1 %v411_v25  ;;  %604 = vmatpush.msra.mxu3 %v444_v26  ;;  %v510_v23 = vld [vmem:[#allocation10 + $0x3a0] sm:$0xff]  ;;  %v186_v25 = vperm.slane %v1291_v18, 1 }
  0x55   :  { %537 = vmatpush.msrb.mxu0 %v394_v27  ;;  %580 = vmatpush.msrb.mxu2 %v429_v28  ;;  %v458_v26 = vld [vmem:[#allocation10 + $0x200] sm:$0xff]  ;;  %v475_v27 = vld [vmem:[#allocation10 + $0x288] sm:$0xff]  ;;  %v493_v28 = vld [vmem:[#allocation10 + $0x318] sm:$0xff] }
  0x56   :  { %560 = vmatpush.msra.mxu1 %v410_v29  ;;  %605 = vmatpush.msra.mxu3 %v443_v34  ;;  %v185_v29 = vperm.slane %v1291_v18, 0 }
  0x57   :  { %614 = vmatpush.msra.mxu0 %v473_v24  ;;  %581 = vmatpush.msrb.mxu2 %v428_v30  ;;  %v509_v24 = vld [vmem:[#allocation10 + $0x398] sm:$0xff]  ;;  %v188_v30 = vperm.slane %v1291_v18, 3 }
  0x58   :  { %637 = vmatpush.msrb.mxu1 %v489_v32  ;;  %606 = vmatpush.msra.mxu3 %v442_v38  ;;  %v492_v32 = vld [vmem:[#allocation10 + $0x310] sm:$0xff] }
  0x59   :  { %615 = vmatpush.msra.mxu0 %v472_v31  ;;  %582 = vmatpush.msrb.mxu2 %v427_v33  ;;  %v474_v31 = vld [vmem:[#allocation10 + $0x280] sm:$0xff]  ;;  %v508_v33 = vld [vmem:[#allocation10 + $0x390] sm:$0xff] }
  0x5a   :  { %638 = vmatpush.msrb.mxu1 %v488_v36  ;;  %683 = vmatpush.msrb.mxu3 %v521_v42  ;;  %v491_v36 = vld [vmem:[#allocation10 + $0x308] sm:$0xff]  ;;  %v490_v42 = vld [vmem:[#allocation10 + $0x300] sm:$0xff] }
  0x5b   :  { %616 = vmatpush.msra.mxu0 %v471_v35  ;;  %583 = vmatpush.msrb.mxu2 %v426_v37  ;;  %v507_v37 = vld [vmem:[#allocation10 + $0x388] sm:$0xff] }
  0x5c   :  { %639 = vmatpush.msrb.mxu1 %v487_v40  ;;  %684 = vmatpush.msrb.mxu3 %v520_v46 }
  0x5d   :  { %617 = vmatpush.msra.mxu0 %v470_v39  ;;  %660 = vmatpush.msra.mxu2 %v505_v41 }
  0x5e   :  { %640 = vmatpush.msrb.mxu1 %v486_v44  ;;  %685 = vmatpush.msrb.mxu3 %v519_v50  ;;  %v190_v50 = vperm.slane %v1291_v18, 5 }
  0x5f   :  { %618 = vmatpush.msra.mxu0 %v469_v43  ;;  %661 = vmatpush.msra.mxu2 %v504_v45  ;;  %v506_v43 = vld [vmem:[#allocation10 + $0x380] sm:$0xff] }
  0x60   :  { %641 = vmatpush.msrb.mxu1 %v485_v48  ;;  %686 = vmatpush.msrb.mxu3 %v518_v54 }
  0x61   :  { %619 = vmatpush.msra.mxu0 %v468_v47  ;;  %662 = vmatpush.msra.mxu2 %v503_v49 }
  0x62   :  { %642 = vmatpush.msrb.mxu1 %v484_v52  ;;  %687 = vmatpush.msrb.mxu3 %v517_v58  ;;  %v187_v52 = vperm.slane %v1291_v18, 2 }
  0x63   :  { %620 = vmatpush.msra.mxu0 %v467_v51  ;;  %663 = vmatpush.msra.mxu2 %v502_v53  ;;  %v189_v53 = vperm.slane %v1291_v18, 4 }
  0x64   :  { %643 = vmatpush.msrb.mxu1 %v483_v56  ;;  %688 = vmatpush.msrb.mxu3 %v516_v62 }
  0x65   :  { %621 = vmatpush.msra.mxu0 %v466_v55  ;;  %664 = vmatpush.msra.mxu2 %v501_v57  ;;  %v192_v55 = vperm.slane %v1291_v18, 7 }
  0x66   :  { %644 = vmatpush.msrb.mxu1 %v482_v60  ;;  %689 = vmatpush.msrb.mxu3 %v515_v2 }
  0x67   :  { %622 = vmatpush.msra.mxu0 %v465_v59  ;;  %665 = vmatpush.msra.mxu2 %v500_v61 }
  0x68   :  { %645 = vmatpush.msrb.mxu1 %v481_v0  ;;  %690 = vmatpush.msrb.mxu3 %v514_v6 }
  0x69   :  { %623 = vmatpush.msra.mxu0 %v464_v63  ;;  %666 = vmatpush.msra.mxu2 %v499_v1 }
  0x6a   :  { %646 = vmatpush.msrb.mxu1 %v480_v4  ;;  %691 = vmatpush.msrb.mxu3 %v513_v11 }
  0x6b   :  { %624 = vmatpush.msra.mxu0 %v463_v3  ;;  %667 = vmatpush.msra.mxu2 %v498_v5 }
  0x6c   :  { %647 = vmatpush.msrb.mxu1 %v479_v8  ;;  %692 = vmatpush.msrb.mxu3 %v512_v14  ;;  %v191_v8 = vperm.slane %v1291_v18, 6  ;;  %v1166_v18 = vmov -inf  }
  0x6d   :  { %625 = vmatpush.msra.mxu0 %v462_v7  ;;  %668 = vmatpush.msra.mxu2 %v497_v9  ;;  %147 = vst.msk [vmem:[#allocation3] sm:$0xff] %vm146_vm1, %v1166_v18 }
  0x6e   :  { %648 = vmatpush.msrb.mxu1 %v478_v13  ;;  %693 = vmatpush.msrb.mxu3 %v511_v19  ;;  %148 = vst.msk [vmem:[#allocation3 + $0x8] sm:$0xff] %vm146_vm1, %v1166_v18 }
  0x6f   :  { %626 = vmatpush.msra.mxu0 %v461_v12  ;;  %669 = vmatpush.msra.mxu2 %v496_v10 }
  0x70   :  { %649 = vmatpush.msrb.mxu1 %v477_v16  ;;  %694 = vmatpush.msrb.mxu3 %v510_v23 }
  0x71   :  { %627 = vmatpush.msra.mxu0 %v460_v15  ;;  %670 = vmatpush.msra.mxu2 %v495_v17 }
  0x72   :  { %650 = vmatpush.msrb.mxu1 %v476_v21  ;;  %695 = vmatpush.msrb.mxu3 %v509_v24  ;;  %v784_v24 = vld [vmem:[#allocation15 + $0x70] sm:$0xff] }
  0x73   :  { %628 = vmatpush.msra.mxu0 %v459_v20  ;;  %671 = vmatpush.msra.mxu2 %v494_v22 }
  0x74   :  { %651 = vmatpush.msrb.mxu1 %v475_v27  ;;  %696 = vmatpush.msrb.mxu3 %v508_v33  ;;  %v1167_v27 = vmov 0   ;;  %v767_v33 = vld [vmem:[#allocation13 + $0x18] sm:$0xff] }
  0x75   :  { %629 = vmatpush.msra.mxu0 %v458_v26  ;;  %672 = vmatpush.msra.mxu2 %v493_v28  ;;  %v785_v28 = vld [vmem:[#allocation15 + $0x78] sm:$0xff] }
  0x76   :  { %652 = vmatpush.msrb.mxu1 %v474_v31  ;;  %697 = vmatpush.msrb.mxu3 %v507_v37  ;;  %v768_v31 = vld [vmem:[#allocation13 + $0x20] sm:$0xff] }
  0x77   :  { %673 = vmatpush.msra.mxu2 %v492_v32  ;;  %941 = vset.pattern.permute.xlu1 %v1167_v27  ;;  %v782_v32 = vld [vmem:[#allocation15 + $0x60] sm:$0xff]  ;;  %v780_v37 = vld [vmem:[#allocation15 + $0x50] sm:$0xff] }
  0x78   :  { %698 = vmatpush.msrb.mxu3 %v506_v43  ;;  %942 = vset.pattern.permute.xlu0 %v1167_v27  ;;  %v711_v43 = vld [vmem:[#allocation3 + $0x8] sm:$0xff] }
  0x79   :  { %674 = vmatpush.msra.mxu2 %v491_v36  ;;  %v710_v36 = vld [vmem:[#allocation3] sm:$0xff] }
  0x7b   :  { %675 = vmatpush.msra.mxu2 %v490_v42  ;;  %v777_v42 = vld [vmem:[#allocation15 + $0x38] sm:$0xff] }
  0xa7   :  { %v248_v34 = vpop.f32.mrf.mxu1 }
  0xa8   :  { %v249_v35 = vadd.f32 %v248_v34, %v186_v25  ;;  %v781_v34 = vld [vmem:[#allocation15 + $0x58] sm:$0xff] }
  0xaa   :  { %v225_v38 = vpop.f32.mrf.mxu2  ;;  %v294_v39 = vpop.f32.mrf.mxu3  ;;  %561 = vmatmul.f32.vlgmr.msra.gmra.mxu1 %v249_v35 }
  0xab   :  { %v226_v40 = vadd.f32 %v225_v38, %v185_v29  ;;  %v295_v41 = vadd.f32 %v294_v39, %v188_v30 }
  0xad   :  { %538 = vmatmul.f32.vlgmr.msrb.gmra.mxu0 %v226_v40  ;;  %607 = vmatmul.f32.vlgmr.msra.gmra.mxu3 %v295_v41  ;;  %v713_v6 = vmax.f32 %v249_v35, %v295_v41  ;;  %v766_v35 = vld [vmem:[#allocation13 + $0x10] sm:$0xff] }
  0xae   :  { %v317_v51 = vpop.f32.mrf.mxu0  ;;  %786 = vmatpush.msrb.mxu0 %v785_v28  ;;  %v778_v41 = vld [vmem:[#allocation15 + $0x40] sm:$0xff] }
  0xaf   :  { %v318_v60 = vadd.f32 %v317_v51, %v189_v53 }
  0xb0   :  { %v251_v44 = vpop.f32.mrf.mxu1  ;;  %787 = vmatpush.msrb.mxu0 %v784_v24 }
  0xb1   :  { %v252_v45 = vadd.f32 %v251_v44, %v186_v25  ;;  %v776_v44 = vld [vmem:[#allocation15 + $0x30] sm:$0xff] }
  0xb2   :  { %v228_v46 = vpop.f32.mrf.mxu2  ;;  %v297_v47 = vpop.f32.mrf.mxu3 }
  0xb3   :  { %v229_v48 = vadd.f32 %v228_v46, %v185_v29  ;;  %v298_v49 = vadd.f32 %v297_v47, %v188_v30  ;;  %564 = vmatmul.f32.gmra.mxu1 %v252_v45  ;;  %v783_v29 = vld [vmem:[#allocation15 + $0x68] sm:$0xff]  ;;  %v769_v30 = vld [vmem:[#allocation13 + $0x28] sm:$0xff] }
  0xb4   :  { %826 = vmatpush.msra.mxu1 %v769_v30  ;;  %788 = vmatpush.msrb.mxu0 %v783_v29  ;;  %v775_v47 = vld [vmem:[#allocation15 + $0x28] sm:$0xff] }
  0xb5   :  { %541 = vmatmul.f32.gmra.mxu0 %v229_v48  ;;  %610 = vmatmul.f32.gmra.mxu3 %v298_v49  ;;  %v722_v10 = vmax.f32 %v252_v45, %v298_v49  ;;  %v774_v49 = vld [vmem:[#allocation15 + $0x20] sm:$0xff] }
  0xb6   :  { %827 = vmatpush.msra.mxu1 %v768_v31  ;;  %789 = vmatpush.msrb.mxu0 %v782_v32 }
  0xb7   :  { %v320_v63 = vpop.f32.mrf.mxu0 }
  0xb8   :  { %v340_v54 = vpop.f32.mrf.mxu1  ;;  %v321_v4 = vadd.f32 %v320_v63, %v189_v53  ;;  %828 = vmatpush.msra.mxu1 %v767_v33  ;;  %790 = vmatpush.msrb.mxu0 %v781_v34  ;;  %v772_v53 = vld [vmem:[#allocation15 + $0x10] sm:$0xff] }
  0xb9   :  { %v341_v56 = vadd.f32 %v340_v54, %v190_v50  ;;  %v765_v54 = vld [vmem:[#allocation13 + $0x8] sm:$0xff] }
  0xba   :  { %v271_v57 = vpop.f32.mrf.mxu2  ;;  %v386_v58 = vpop.f32.mrf.mxu3  ;;  %829 = vmatpush.msra.mxu1 %v766_v35  ;;  %791 = vmatpush.msrb.mxu0 %v780_v37  ;;  %v944_v35 = vld [vmem:[%s1325_s8] ss:$0 sm:$0xff]  ;;  %s1168_s8 = smov [#allocation16]  }
  0xbb   :  { %v272_v59 = vadd.f32 %v271_v57, %v187_v52  ;;  %653 = vmatmul.f32.vlgmr.msrb.gmra.mxu1 %v341_v56  ;;  %v387_v61 = vadd.f32 %v386_v58, %v192_v55  ;;  %v715_v9 = vmax.f32 %v713_v6, %v341_v56  ;;  %v764_v58 = vld [vmem:[#allocation13] sm:$0xff]  ;;  %s891_s23 = sshll.u32 %s1168_s8, 4  ;;  %s892_s23 = int_to_ptr.vmem [resolvable:$true] %s891_s23 }
  0xbc   :  { %830 = vmatpush.msra.mxu1 %v765_v54 }
  0xbd   :  { %584 = vmatmul.f32.vlgmr.msrb.gmra.mxu2 %v272_v59  ;;  %630 = vmatmul.f32.vlgmr.msra.gmra.mxu0 %v318_v60  ;;  %v712_v7 = vmax.f32 %v226_v40, %v272_v59  ;;  %v717_v15 = vmax.f32 %v715_v9, %v387_v61  ;;  %v779_v40 = vld [vmem:[#allocation15 + $0x48] sm:$0xff]  ;;  %v770_v59 = vld [vmem:[#allocation15] sm:$0xff] }
  0xbe   :  { %699 = vmatmul.f32.vlgmr.msrb.gmra.mxu3 %v387_v61  ;;  %792 = vmatpush.msrb.mxu0 %v779_v40 }
  0xbf   :  { %v714_v12 = vmax.f32 %v712_v7, %v318_v60  ;;  %831 = vmatpush.msra.mxu1 %v764_v58  ;;  %v762_v60 = vld [vmem:[#allocation12] sm:$0xff] }
  0xc0   :  { %v343_v62 = vpop.f32.mrf.mxu1  ;;  %793 = vmatpush.msrb.mxu0 %v778_v41 }
  0xc1   :  { %v344_v0 = vadd.f32 %v343_v62, %v190_v50  ;;  %v773_v50 = vld [vmem:[#allocation15 + $0x18] sm:$0xff] }
  0xc2   :  { %v274_v1 = vpop.f32.mrf.mxu2  ;;  %v389_v2 = vpop.f32.mrf.mxu3  ;;  %794 = vmatpush.msrb.mxu0 %v777_v42 }
  0xc3   :  { %v275_v3 = vadd.f32 %v274_v1, %v187_v52  ;;  %656 = vmatmul.f32.gmra.mxu1 %v344_v0  ;;  %v390_v5 = vadd.f32 %v389_v2, %v192_v55  ;;  %v724_v19 = vmax.f32 %v722_v10, %v344_v0  ;;  %v771_v55 = vld [vmem:[#allocation15 + $0x8] sm:$0xff] }
  0xc4   :  { %795 = vmatpush.msrb.mxu0 %v776_v44  ;;  %v763_v2 = vld [vmem:[#allocation12 + $0x8] sm:$0xff] }
  0xc5   :  { %587 = vmatmul.f32.gmra.mxu2 %v275_v3  ;;  %633 = vmatmul.f32.gmra.mxu0 %v321_v4  ;;  %v721_v16 = vmax.f32 %v229_v48, %v275_v3  ;;  %v726_v23 = vmax.f32 %v724_v19, %v390_v5 }
  0xc6   :  { %702 = vmatmul.f32.gmra.mxu3 %v390_v5  ;;  %796 = vmatpush.msrb.mxu0 %v775_v47 }
  0xc7   :  { %v723_v21 = vmax.f32 %v721_v16, %v321_v4  ;;  %v943_v16 = vld [vmem:[%s1321_s4] ss:$0 sm:$0xff] }
  0xc8   :  { %797 = vmatpush.msrb.mxu0 %v774_v49 }
  0xca   :  { %v363_v11 = vpop.f32.mrf.mxu2  ;;  %798 = vmatpush.msrb.mxu0 %v773_v50 }
  0xcb   :  { %v364_v13 = vadd.f32 %v363_v11, %v191_v8  ;;  %925 = vmatmul.msk.f32.vlgmr.msra.gmra.mxu1 %vm809_vm2, %v762_v60 }
  0xcc   :  { %799 = vmatpush.msrb.mxu0 %v772_v53 }
  0xcd   :  { %676 = vmatmul.f32.vlgmr.msra.gmra.mxu2 %v364_v13  ;;  %v716_v14 = vmax.f32 %v714_v12, %v364_v13 }
  0xce   :  { %800 = vmatpush.msrb.mxu0 %v771_v55 }
  0xcf   :  { %v718_v17 = vmax.f32 %v716_v14, %v717_v15 }
  0xd0   :  { %801 = vmatpush.msrb.mxu0 %v770_v59 }
  0xd1   :  { %719 = vmax.xlane.f32.xlu0 %v718_v17 }
  0xd2   :  { %v366_v20 = vpop.f32.mrf.mxu2 }
  0xd3   :  { %v367_v22 = vadd.f32 %v366_v20, %v191_v8  ;;  %926 = vmatmul.msk.f32.gmra.mxu1 %vm809_vm2, %v763_v2 }
  0xd5   :  { %v725_v25 = vmax.f32 %v723_v21, %v367_v22  ;;  %679 = vmatmul.f32.gmra.mxu2 %v367_v22 }
  0xd7   :  { %v727_v26 = vmax.f32 %v725_v25, %v726_v23 }
  0xd9   :  { %728 = vmax.xlane.f32.xlu0 %v727_v26 }
 0x127   :  { %v562_v56 = vpop.f32.mrf.mxu1 }
 0x12a   :  { %v539_v52 = vpop.f32.mrf.mxu0 }
 0x12b   :  { %v563_v63 = vadd.f32 %v562_v56, %v539_v52 }
 0x130   :  { %v608_v62 = vpop.f32.mrf.mxu3  ;;  %v565_v0 = vpop.f32.mrf.mxu1 }
 0x132   :  { %v542_v61 = vpop.f32.mrf.mxu0 }
 0x133   :  { %v566_v7 = vadd.f32 %v565_v0, %v542_v61 }
 0x138   :  { %v611_v6 = vpop.f32.mrf.mxu3  ;;  %v654_v8 = vpop.f32.mrf.mxu1 }
 0x13a   :  { %v631_v4 = vpop.f32.mrf.mxu0 }
 0x140   :  { %v585_v57 = vpop.f32.mrf.mxu2  ;;  %v657_v20 = vpop.f32.mrf.mxu1 }
 0x141   :  { %v586_v3 = vadd.f32 %v585_v57, %v563_v63  ;;  %v700_v17 = vpop.f32.mrf.mxu3 }
 0x142   :  { %v634_v14 = vpop.f32.mrf.mxu0 }
 0x143   :  { %v609_v5 = vadd.f32 %v608_v62, %v586_v3 }
 0x144   :  { %v720_v38 = vpop.xlane.xlu0 %719 }
 0x145   :  { %v730_v39 = vmax.f32 %v710_v36, %v720_v38  ;;  %v632_v9 = vadd.f32 %v631_v4, %v609_v5 }
 0x147   :  { %733 = vst.msk [vmem:[#allocation3] sm:$0xff] %vm146_vm1, %v730_v39  ;;  %v655_v13 = vadd.f32 %v654_v8, %v632_v9 }
 0x148   :  { %v588_v1 = vpop.f32.mrf.mxu2  ;;  %v833_v34 = vpop.f32.mrf.mxu1 }
 0x149   :  { %v589_v11 = vadd.f32 %v588_v1, %v566_v7  ;;  %v703_v24 = vpop.f32.mrf.mxu3 }
 0x14b   :  { %v612_v10 = vadd.f32 %v611_v6, %v589_v11 }
 0x14c   :  { %v729_v45 = vpop.xlane.xlu0 %728 }
 0x14d   :  { %v731_v46 = vmax.f32 %v711_v43, %v729_v45  ;;  %v635_v19 = vadd.f32 %v634_v14, %v612_v10 }
 0x14e   :  { %v740_v48 = vld [vmem:[#allocation3] sm:$0xff] }
 0x14f   :  { %734 = vst.msk [vmem:[#allocation3 + $0x8] sm:$0xff] %vm146_vm1, %v731_v46  ;;  %745 = vperm.xlu1 %941, %v740_v48   ;;  %v658_v26 = vadd.f32 %v657_v20, %v635_v19 }
 0x150   :  { %v677_v12 = vpop.f32.mrf.mxu2  ;;  %v836_v40 = vpop.f32.mrf.mxu1 }
 0x151   :  { %v678_v15 = vadd.f32 %v677_v12, %v655_v13 }
 0x153   :  { %v701_v22 = vadd.f32 %v700_v17, %v678_v15 }
 0x156   :  { %v741_v51 = vld [vmem:[#allocation3 + $0x8] sm:$0xff] }
 0x157   :  { %750 = vperm.xlu1 %941, %v741_v51  }
 0x158   :  { %v680_v25 = vpop.f32.mrf.mxu2 }
 0x159   :  { %v681_v27 = vadd.f32 %v680_v25, %v658_v26 }
 0x15b   :  { %v704_v30 = vadd.f32 %v703_v24, %v681_v27 }
 0x1c1   :  { %v746_v21 = vpop.permute.xlu1 %745 }
 0x1c2   :  { %v756_v23 = vmul.f32 %v943_v16, %v746_v21 }
 0x1c4   :  { %v758_v18 = vsub.f32 %v701_v22, %v756_v23 }
 0x1c6   :  { %v760_v28 = vmax.f32 %v758_v18, 0.0 }
 0x1c8   :  { %802 = vmatmul.f32.vlgmr.msrb.gmra.mxu0 %v760_v28 }
 0x1c9   :  { %v751_v29 = vpop.permute.xlu1 %750 }
 0x1ca   :  { %v757_v31 = vmul.f32 %v943_v16, %v751_v29 }
 0x1cc   :  { %v759_v32 = vsub.f32 %v704_v30, %v757_v31 }
 0x1ce   :  { %v761_v33 = vmax.f32 %v759_v32, 0.0 }
 0x1d0   :  { %805 = vmatmul.f32.gmra.mxu0 %v761_v33 }
 0x245   :  { %v803_v36 = vpop.f32.mrf.mxu0 }
 0x246   :  { %v834_v37 = vadd.f32 %v833_v34, %v803_v36 }
 0x248   :  { %v843_v38 = vadd.f32 %v944_v35, %v834_v37 }
 0x24a   :  { %v845_v39 = vsub.f32 0.0, %v843_v38 }
 0x24c   :  { %v847_v41 = vmul.f32 1.442695, %v845_v39 }
 0x24d   :  { %v806_v42 = vpop.f32.mrf.mxu0 }
 0x24e   :  { %945 = vpow2.f32 %v847_v41  ;;  %v837_v43 = vadd.f32 %v836_v40, %v806_v42 }
 0x250   :  { %v844_v44 = vadd.f32 %v944_v35, %v837_v43 }
 0x252   :  { %v846_v45 = vsub.f32 0.0, %v844_v44 }
 0x254   :  { %v946_v46 = vpop.eup %945  ;;  %v849_v47 = vmul.f32 1.442695, %v846_v45 }
 0x255   :  { %v851_v48 = vadd.f32 1.0, %v946_v46 }
 0x256   :  { %947 = vpow2.f32 %v849_v47 }
 0x257   :  { %949 = vrcp.f32 %v851_v48  ;;  %v864_v54 = vand.u32 2147483648, %v851_v48  ;;  %v862_v56 = vand.u32 2147483647, %v851_v48  ;;  %vm858_vm4 = vweird.f32 %v851_v48 }
 0x259   :  { %v865_v59 = vor.u32 1.1754944e-38, %v864_v54  ;;  %vm863_vm6 = vcmp.eq.f32.partialorder %v862_v56, 8.507059e+37 }
 0x25c   :  { %v948_v49 = vpop.eup %947 }
 0x25d   :  { %v950_v50 = vpop.eup %949  ;;  %v852_v51 = vadd.f32 1.0, %v948_v49 }
 0x25e   :  { %v854_v52 = vmul.f32 %v950_v50, %v851_v48  ;;  %vm859_vm3 = vweird.f32 %v950_v50 }
 0x25f   :  { %951 = vrcp.f32 %v852_v51  ;;  %vm860_vm5 = vmor %vm858_vm4, %vm859_vm3  ;;  %v879_v1 = vand.u32 2147483648, %v852_v51  ;;  %v877_v3 = vand.u32 2147483647, %v852_v51  ;;  %vm873_vm8 = vweird.f32 %v852_v51 }
 0x260   :  { %v855_v53 = vsub.f32 1.0, %v854_v52 }
 0x261   :  { %v880_v5 = vor.u32 1.1754944e-38, %v879_v1  ;;  %vm878_vm10 = vcmp.eq.f32.partialorder %v877_v3, 8.507059e+37 }
 0x262   :  { %v856_v55 = vmul.f32 %v950_v50, %v855_v53 }
 0x264   :  { %v857_v57 = vadd.f32 %v950_v50, %v856_v55 }
 0x265   :  { %v952_v58 = vpop.eup %951 }
 0x266   :  { %v869_v60 = vmul.f32 %v952_v58, %v852_v51  ;;  %v861_v61 = vsel %vm860_vm5, %v950_v50, %v857_v57  ;;  %vm874_vm7 = vweird.f32 %v952_v58 }
 0x267   :  { %v866_v62 = vsel %vm863_vm6, %v865_v59, %v861_v61  ;;  %vm875_vm9 = vmor %vm873_vm8, %vm874_vm7 }
 0x268   :  { %v870_v63 = vsub.f32 1.0, %v869_v60  ;;  %v883_v0 = vmul.f32 %v866_v62, %v760_v28 }
 0x26a   :  { %v871_v2 = vmul.f32 %v952_v58, %v870_v63  ;;  %885 = vst [vmem:[#allocation16] sm:$0xff] %v883_v0 }
 0x26c   :  { %v872_v4 = vadd.f32 %v952_v58, %v871_v2 }
 0x26e   :  { %v876_v6 = vsel %vm875_vm9, %v952_v58, %v872_v4 }
 0x26f   :  { %v881_v7 = vsel %vm878_vm10, %v880_v5, %v876_v6 }
 0x270   :  { %v884_v8 = vmul.f32 %v881_v7, %v761_v33 }
 0x272   :  { %886 = vst [vmem:[#allocation16 + $0x8] sm:$0xff] %v884_v8 }
 0x273   :  { %899 = dma.vmem_to_hbm [thread:$0]  %s892_s23, 256, %s894_s27, [#allocation6], %s1159_s1, %s1159_s1, %s1160_s24  }
 0x274   :  { %1153 = dma.done.wait [#allocation6], 256  }
 0x275   :  { %1154 = vsyncadd [#allocation6], 4294967040 }
 0x276   :  { %904 = vsyncpa [#allocation5], 1 }
 0x277   :  { %905 = vsyncpa [#allocation8], 1 }
 0x278   :  { %906 = vsyncpa [#allocation11], 1 }
 0x279   :  { %907 = vsyncpa [#allocation14], 1 }
 0x27a   :  { %908 = vsyncpa [#allocation6], 1 }

</bundles_post_ra>
